<compile_context>
chip_gen: v7x
topology: tpu7x:2x2x1
jax: 0.10.0
libtpu: 0.0.40
codegen_flags: <defaults>
</compile_context>

<pallas_src>
import functools

import jax
import jax.numpy as jnp
from jax.experimental import pallas as pl
from jax.experimental.pallas import tpu as pltpu


def _round_up(x, m):
    return (x + m - 1) // m * m


def _fusion_kernel(lam_ref, a_ref, b_ref, c_ref, w_ref, bias_ref, o_ref, *,
                   precision):
    """relu((l1*a + l2*b + l3*c) @ W + bias) for one row tile.

    lam_ref   : SMEM (3,)          f32 lambdas
    a/b/c_ref : VMEM (tm, d_in)    feature row tiles (f32 or bf16)
    w_ref     : VMEM (d_in, d_out) single un-replicated weight (resident)
    bias_ref  : VMEM (1, d_out)    f32 bias
    o_ref     : VMEM (tm, d_out)   f32 output
    """
    # Lambda-weighted sum on the VPU with f32 intermediates, then cast to the
    # matmul input dtype (bf16 on the low-precision path) for the MXU.
    h = (lam_ref[0] * a_ref[...].astype(jnp.float32)
         + lam_ref[1] * b_ref[...].astype(jnp.float32)
         + lam_ref[2] * c_ref[...].astype(jnp.float32))
    h = h.astype(w_ref.dtype)
    y = jnp.dot(h, w_ref[...],
                preferred_element_type=jnp.float32,
                precision=precision)
    y = y + bias_ref[...]
    o_ref[...] = jnp.maximum(y, 0.0).astype(o_ref.dtype)


def feature_fusion(feat_local, feat_global, feat_sim, lambdas, w_t, bias, *,
                   compute_dtype=jnp.float32, precision=None):
    """One FeatureFusion block as a single pallas_call (no activation copies)."""
    n, d_in = feat_local.shape
    d_out = w_t.shape[1]
    x_dtype = jnp.dtype(compute_dtype)
    x_bytes = x_dtype.itemsize
    sub = 16 if x_dtype == jnp.bfloat16 else 8   # sublane packing granule

    # ---- row tiling ---------------------------------------------------------
    # Aim for >= 2 row tiles (even split across v7x's two TensorCores), cap at
    # 512 rows, shrink while the double-buffered working set exceeds budget.
    tm = _round_up(max(1, (n + 1) // 2), sub)
    tm = min(tm, 512, _round_up(n, sub))

    def _vmem_bytes(t):
        return (2 * 3 * t * d_in * x_bytes      # a/b/c tiles, double buffered
                + 2 * t * d_out * 4             # output tile, double buffered
                + 2 * d_in * d_out * x_bytes    # resident weight (<= 2 buffers)
                + 2 * d_out * 4)                # bias

    vmem_budget = 28 * 1024 * 1024              # fits v5e/v6e/v7x scoped VMEM
    while _vmem_bytes(tm) > vmem_budget and tm > sub:
        tm = max(sub, _round_up(tm // 2, sub))
    n_tiles = -(-n // tm)
    vmem_limit = int(min(64 * 1024 * 1024,
                         max(32 * 1024 * 1024, 2 * _vmem_bytes(tm))))

    # ---- wrapper-side dtype plumbing (casts only; no activation reshuffles) --
    if feat_local.dtype != x_dtype:
        feat_local = feat_local.astype(x_dtype)
        feat_global = feat_global.astype(x_dtype)
        feat_sim = feat_sim.astype(x_dtype)
    w = w_t.astype(x_dtype)
    bias2d = bias.astype(jnp.float32).reshape(1, d_out)
    lam = lambdas.astype(jnp.float32).reshape(3)

    cost = pl.CostEstimate(
        flops=2 * n * d_in * d_out + 5 * n * d_in,
        transcendentals=0,
        bytes_accessed=((3 * n * d_in + d_in * d_out) * x_bytes
                        + (n * d_out + d_out + 3) * 4),
    )

    kernel = functools.partial(_fusion_kernel, precision=precision)
    return pl.pallas_call(
        kernel,
        out_shape=jax.ShapeDtypeStruct((n, d_out), jnp.float32),
        grid_spec=pltpu.PrefetchScalarGridSpec(
            num_scalar_prefetch=0,
            grid=(n_tiles,),
            in_specs=[
                # lambdas: whole (3,) array in SMEM
                pl.BlockSpec(memory_space=pltpu.MemorySpace.SMEM),
                # features: new row tile per grid step
                pl.BlockSpec((tm, d_in), lambda i: (i, 0)),
                pl.BlockSpec((tm, d_in), lambda i: (i, 0)),
                pl.BlockSpec((tm, d_in), lambda i: (i, 0)),
                # weight / bias: constant block index -> fetched once, resident
                pl.BlockSpec((d_in, d_out), lambda i: (0, 0)),
                pl.BlockSpec((1, d_out), lambda i: (0, 0)),
            ],
            out_specs=pl.BlockSpec((tm, d_out), lambda i: (i, 0)),
        ),
        compiler_params=pltpu.CompilerParams(
            dimension_semantics=("parallel",),
            vmem_limit_bytes=vmem_limit),
        cost_estimate=cost,
    )(lam, feat_local, feat_global, feat_sim, w, bias2d)


def hetero_feature_fusion(params, disease_local, disease_global, disease_sim,
                          drug_local, drug_global, drug_sim,
                          gene_local, gene_global, gene_sim, *,
                          compute_dtype=jnp.float32, precision=None):
    """HeteroFeatureFusion.forward -> (h_disease, h_drug, h_gene)."""
    feats = ((disease_local, disease_global, disease_sim),
             (drug_local, drug_global, drug_sim),
             (gene_local, gene_global, gene_sim))
    outs = []
    for name, (a, b, c) in zip(("disease", "drug", "gene"), feats):
        p = params[name]
        outs.append(feature_fusion(a, b, c, p["lambdas"], p["w_t"], p["bias"],
                                   compute_dtype=compute_dtype,
                                   precision=precision))
    return tuple(outs)


def init_fusion_params(key, d_in, d_out):
    """Deterministic params matching FeatureFusion.__init__ shapes."""
    k_w, k_b = jax.random.split(key)
    # nn.Linear default init: U(-1/sqrt(d_in), 1/sqrt(d_in))
    bound = 1.0 / jnp.sqrt(jnp.float32(d_in))
    w = jax.random.uniform(k_w, (d_out, d_in), jnp.float32, -bound, bound)
    b = jax.random.uniform(k_b, (d_out,), jnp.float32, -bound, bound)
    lambdas = jnp.ones((3,), jnp.float32)  # lambda1 = lambda2 = lambda3 = 1.0
    return {"lambdas": lambdas, "w_t": w.T, "bias": b}


def _ref_fusion(a, b, c, lambdas, w_t, bias):
    h = lambdas[0] * a + lambdas[1] * b + lambdas[2] * c
    y = jnp.dot(h, w_t, precision=jax.lax.Precision.HIGHEST) + bias
    return jnp.maximum(y, 0.0)


if __name__ == "__main__":
    d_in, d_out = 32, 16
    num_disease, num_drug, num_gene = 16, 8, 24

    key = jax.random.PRNGKey(0)
    keys = jax.random.split(key, 12)

    params = {
        "disease": init_fusion_params(keys[0], d_in, d_out),
        "drug": init_fusion_params(keys[1], d_in, d_out),
        "gene": init_fusion_params(keys[2], d_in, d_out),
    }

    def rnd(k, n):
        return jax.random.normal(k, (n, d_in), jnp.float32)

    disease = (rnd(keys[3], num_disease), rnd(keys[4], num_disease),
               rnd(keys[5], num_disease))
    drug = (rnd(keys[6], num_drug), rnd(keys[7], num_drug),
            rnd(keys[8], num_drug))
    gene = (rnd(keys[9], num_gene), rnd(keys[10], num_gene),
            rnd(keys[11], num_gene))

    feats_by_name = {"disease": disease, "drug": drug, "gene": gene}
    refs = {name: _ref_fusion(*feats_by_name[name],
                              params[name]["lambdas"],
                              params[name]["w_t"],
                              params[name]["bias"])
            for name in ("disease", "drug", "gene")}

    # --- f32, HIGHEST precision: bit-exact validation path ------------------
    outs = jax.block_until_ready(hetero_feature_fusion(
        params, *disease, *drug, *gene,
        precision=jax.lax.Precision.HIGHEST))
    for out, name in zip(outs, ("disease", "drug", "gene")):
        ref = refs[name]
        assert out.shape == ref.shape, f"{name}: shape mismatch"
        assert jnp.allclose(out, ref, atol=1e-4, rtol=1e-4), \
            f"{name}: mismatch vs reference (highest precision)"

    # --- f32, DEFAULT precision: production path (looser check) -------------
    outs_def = jax.block_until_ready(hetero_feature_fusion(
        params, *disease, *drug, *gene))
    for out, name in zip(outs_def, ("disease", "drug", "gene")):
        ref = refs[name]
        assert out.shape == ref.shape, f"{name}: default-precision shape mismatch"
        assert jnp.allclose(out, ref, atol=1e-1, rtol=1e-1), \
            f"{name}: default-precision path too far off"

    # --- bf16 MXU-input path (wrapper-side cast), f32 accumulation ----------
    outs_bf16 = jax.block_until_ready(hetero_feature_fusion(
        params, *disease, *drug, *gene, compute_dtype=jnp.bfloat16))
    for out, name in zip(outs_bf16, ("disease", "drug", "gene")):
        ref = refs[name]
        assert out.shape == ref.shape, f"{name}: bf16 shape mismatch"
        assert jnp.allclose(out, ref, atol=3e-1, rtol=1e-1), \
            f"{name}: bf16 path too far off"

    print("KERNEL_OK")
</pallas_src>

<mosaic_0001>
module attributes {stable_mosaic.version = 11 : i64} {
  func.func @_fusion_kernel(%arg0: i32, %arg1: memref<3xf32, #tpu.memory_space<smem>>, %arg2: memref<8x32xf32, #tpu.memory_space<vmem>>, %arg3: memref<8x32xf32, #tpu.memory_space<vmem>>, %arg4: memref<8x32xf32, #tpu.memory_space<vmem>>, %arg5: memref<32x16xf32, #tpu.memory_space<vmem>>, %arg6: memref<1x16xf32, #tpu.memory_space<vmem>>, %arg7: memref<8x16xf32, #tpu.memory_space<vmem>>) attributes {dimension_semantics = [#tpu.dimension_semantics<parallel>], iteration_bounds = array<i64: 2>, scalar_prefetch = 0 : i64, scratch_operands = 0 : i64, tpu.core_type = #tpu.core_type<tc>, window_params = [{transform_indices = @transform_0, window_bounds = array<i64: 3>}, {transform_indices = @transform_1, window_bounds = array<i64: 8, 32>}, {transform_indices = @transform_2, window_bounds = array<i64: 8, 32>}, {transform_indices = @transform_3, window_bounds = array<i64: 8, 32>}, {pipeline_mode = #tpu.pipeline_mode<synchronous>, transform_indices = @transform_4, window_bounds = array<i64: 32, 16>}, {pipeline_mode = #tpu.pipeline_mode<synchronous>, transform_indices = @transform_5, window_bounds = array<i64: 1, 16>}, {transform_indices = @transform_6, window_bounds = array<i64: 8, 16>}]} {
    %c0 = arith.constant 0 : index
    %0 = memref.load %arg1[%c0] : memref<3xf32, #tpu.memory_space<smem>>
    %c0_0 = arith.constant 0 : index
    %c0_1 = arith.constant 0 : index
    %1 = vector.load %arg2[%c0_0, %c0_1] : memref<8x32xf32, #tpu.memory_space<vmem>>, vector<8x32xf32>
    %2 = vector.broadcast %0 : f32 to vector<8x32xf32>
    %3 = arith.mulf %2, %1 : vector<8x32xf32>
    %c1 = arith.constant 1 : index
    %4 = memref.load %arg1[%c1] : memref<3xf32, #tpu.memory_space<smem>>
    %c0_2 = arith.constant 0 : index
    %c0_3 = arith.constant 0 : index
    %5 = vector.load %arg3[%c0_2, %c0_3] : memref<8x32xf32, #tpu.memory_space<vmem>>, vector<8x32xf32>
    %6 = vector.broadcast %4 : f32 to vector<8x32xf32>
    %7 = arith.mulf %6, %5 : vector<8x32xf32>
    %8 = arith.addf %3, %7 : vector<8x32xf32>
    %c2 = arith.constant 2 : index
    %9 = memref.load %arg1[%c2] : memref<3xf32, #tpu.memory_space<smem>>
    %c0_4 = arith.constant 0 : index
    %c0_5 = arith.constant 0 : index
    %10 = vector.load %arg4[%c0_4, %c0_5] : memref<8x32xf32, #tpu.memory_space<vmem>>, vector<8x32xf32>
    %11 = vector.broadcast %9 : f32 to vector<8x32xf32>
    %12 = arith.mulf %11, %10 : vector<8x32xf32>
    %13 = arith.addf %8, %12 : vector<8x32xf32>
    %c0_6 = arith.constant 0 : index
    %c0_7 = arith.constant 0 : index
    %14 = vector.load %arg5[%c0_6, %c0_7] : memref<32x16xf32, #tpu.memory_space<vmem>>, vector<32x16xf32>
    %cst = arith.constant dense<0.000000e+00> : vector<8x16xf32>
    %15 = tpu.matmul %13, %14, %cst {dimension_numbers = #tpu.dot_dimension_numbers<[1], [0], [0], [1], [0, 0, 1, 1], [], []>, precision = #tpu.contract_precision<fp32>} : vector<8x32xf32>, vector<32x16xf32>, vector<8x16xf32> -> vector<8x16xf32>
    %c0_8 = arith.constant 0 : index
    %c0_9 = arith.constant 0 : index
    %16 = vector.load %arg6[%c0_8, %c0_9] : memref<1x16xf32, #tpu.memory_space<vmem>>, vector<1x16xf32>
    %17 = vector.broadcast %16 : vector<1x16xf32> to vector<8x16xf32>
    %18 = arith.addf %15, %17 : vector<8x16xf32>
    %cst_10 = arith.constant 0.000000e+00 : f32
    %19 = vector.broadcast %cst_10 : f32 to vector<8x16xf32>
    %20 = arith.maximumf %18, %19 : vector<8x16xf32>
    %c0_11 = arith.constant 0 : index
    %c0_12 = arith.constant 0 : index
    %21 = vector.load %arg7[%c0_11, %c0_12] : memref<8x16xf32, #tpu.memory_space<vmem>>, vector<8x16xf32>
    tpu.vector_store %arg7[%c0_11, %c0_12], %20 {strides = array<i32>} : memref<8x16xf32, #tpu.memory_space<vmem>>, vector<8x16xf32>,
    return
  }
  func.func @transform_0(%arg0: i32) -> i32 {
    %c0_i32 = arith.constant 0 : i32
    %c0_i32_0 = arith.constant 0 : i32
    return %c0_i32 : i32
  }
  func.func @transform_1(%arg0: i32) -> (i32, i32) {
    %c0_i32 = arith.constant 0 : i32
    %c0_i32_0 = arith.constant 0 : i32
    return %arg0, %c0_i32 : i32, i32
  }
  func.func @transform_2(%arg0: i32) -> (i32, i32) {
    %c0_i32 = arith.constant 0 : i32
    %c0_i32_0 = arith.constant 0 : i32
    return %arg0, %c0_i32 : i32, i32
  }
  func.func @transform_3(%arg0: i32) -> (i32, i32) {
    %c0_i32 = arith.constant 0 : i32
    %c0_i32_0 = arith.constant 0 : i32
    return %arg0, %c0_i32 : i32, i32
  }
  func.func @transform_4(%arg0: i32) -> (i32, i32) {
    %c0_i32 = arith.constant 0 : i32
    %c0_i32_0 = arith.constant 0 : i32
    %c0_i32_1 = arith.constant 0 : i32
    return %c0_i32, %c0_i32_0 : i32, i32
  }
  func.func @transform_5(%arg0: i32) -> (i32, i32) {
    %c0_i32 = arith.constant 0 : i32
    %c0_i32_0 = arith.constant 0 : i32
    %c0_i32_1 = arith.constant 0 : i32
    return %c0_i32, %c0_i32_0 : i32, i32
  }
  func.func @transform_6(%arg0: i32) -> (i32, i32) {
    %c0_i32 = arith.constant 0 : i32
    %c0_i32_0 = arith.constant 0 : i32
    return %arg0, %c0_i32 : i32, i32
  }
}

</mosaic_0001>

<bundles_post_ra>
// kernel: tpu_custom_call.1
= control target key start
LH: loop header
LB: loop body
LE: loop exit
PB: predicated region body
PF: predicated region fallthrough
CT: control target
= control target key end

     0   :  { %11 = vsyncpa [#allocation4], 0  ;;  %s1434_s0 = inlined_call_operand.hbm [shape: f32[3], index: 0, kind: input, shape index: {}]   ;;  %s1435_s1 = inlined_call_operand.vmem [shape: f32[16,32], index: 1, kind: input, shape index: {}]   ;;  %s1436_s2 = inlined_call_operand.vmem [shape: f32[16,32], index: 2, kind: input, shape index: {}]   ;;  %s1437_s3 = inlined_call_operand.vmem [shape: f32[16,32], index: 3, kind: input, shape index: {}]   ;;  %s1438_s4 = inlined_call_operand.vmem [shape: f32[32,16], index: 4, kind: input, shape index: {}]   ;;  %s1439_s5 = inlined_call_operand.vmem [shape: f32[1,16], index: 5, kind: input, shape index: {}]   ;;  %s1440_s6 = inlined_call_operand.hbm [shape: f32[16,16], index: 6, kind: output, shape index: {}]  }
   0x1   :  { %12 = vsyncpa [#allocation3], 0 }
   0x2   :  { %14 = vsyncpa [#allocation3 + $0x1], 0  ;;  %s1252_s21 = smov 0   ;;  %s1254_s22 = smov 0  }
   0x3   :  { %s1256_s23 = smov 0   ;;  %s1258_s24 = smov 0  }
   0x4 LB: > { %s1273_s25 = sadd.s32 4294967295, %s1210_s24   ;;  %s919_s26 = sadd.s32 4294967294, %s1210_s24   ;;  %s1210_s24 = sphi %s1258_s24, %s1447_s24   ;;  %s1206_s23 = sphi %s1256_s23, %s1446_s23   ;;  %s1202_s22 = sphi %s1254_s22, %s1445_s22   ;;  %s1198_s21 = sphi %s1252_s21, %s1444_s21  }
   0x5   : > { %s1277_s27 = sadd.s32 1, %s1210_s24   ;;  %s168_s28 = sadd.s32 1, %s1206_s23 }
   0x6   : > { %s165_s29 = ssub.s32 %s1210_s24, %s1277_s27  ;;  %p178_p0 = scmp.ne.s32.totalorder %s1206_s23, %s1202_s22 }
   0x7   : > { %p166_p1 = scmp.eq.s32.totalorder %s165_s29, 0  ;;  %p179_p2 = scmp.eq.s32.totalorder %s1273_s25, 1 }
   0x8   : > { %p184_p3 = scmp.ne.s32.totalorder %s1202_s22, %s1198_s21  ;;  %p185_p4 = scmp.eq.s32.totalorder %s919_s26, 1 }
   0x9   : > { %s1288_s30 = scalar_select %p166_p1, %s1206_s23, %s168_s28  }
   0xa   : > { %p1290_p5 = por %p179_p2, %p178_p0  ;;  %p1294_p6 = por %p185_p4, %p184_p3 }
   0xb   : > { %p920_p7 = scmp.ge.s32.totalorder %s1210_s24, 1  ;;  %p192_p8 = scmp.lt.s32.totalorder %s1210_s24, 3 }
   0xc   : > { %p1092_p10 = scmp.eq.s32.totalorder %s1273_s25, 0  ;;  %s1131_s12 = scalar_lea.hbm %s1434_s0, 16 }
   0xd   : > { %p1300_p9 = pnand %p920_p7, %p192_p8  ;;  %p1132_p13 = scmp.ne.s32.totalorder %s1434_s0, %s1131_s12 }
   0xe   : > { %p1138_p3 = scmp.lt.u32.totalorder %s1131_s12, %s1434_s0 }
   0xf   : > { %p1084_p11 = pneg %p1300_p9 }
  0x11   : > { %p1085_p12 = pnand %p1092_p10, %p1084_p11 }
  0x13   : > { %p1133_p0 = pneg %p1085_p12 }
  0x15   : > { %p1134_p1 = pnand %p1133_p0, %p1132_p13 }
  0x17   : > { %p1135_p2 = pneg %p1134_p1 }
  0x19   : > { %p1140_p4 = pnand %p1138_p3, %p1135_p2 }
  0x1b   : > { %1143 = shalt.err (!%p1140_p4)
}
  0x1c   : > { %s1212_s17 = smov [#allocation2]   ;;  %243 = sbr.rel (%p1300_p9) target bundleno = 312 (0x138), region = 44 }
  0x1d   : > { %1087 = dma.hbm_to_smem (!%p1085_p12), %s1434_s0, 16, %s1212_s17, [#allocation4]  }
  0x23   : > { %1189 = dma.done.wait (%p1092_p10), [#allocation4], 16  }
  0x24   : > { %1191 = vsyncadd (%p1092_p10), [#allocation4], 4294967280 }
  0x25   : > { %249 = sfence }
  0x26   : > { %v307_v0 = vld [vmem:[%s1438_s4] sm:$0xff]  ;;  %v308_v1 = vld [vmem:[%s1438_s4 + $0x8] sm:$0xff]  ;;  %v309_v2 = vld [vmem:[%s1438_s4 + $0x10] sm:$0xff]  ;;  %v1213_v3 = vmov 0.0|0.0   ;;  %p281_p7 = scmp.lt.s32.totalorder %s1273_s25, 1  ;;  %vm1214_vm0 = vmmov 0  }
  0x27   : > { %1050 = vmatprep.subr.bf16.mxu0 %v1213_v3  ;;  %v323_v4 = vand.u32 4294901760, %v307_v0  ;;  %v326_v5 = vand.u32 4294901760, %v308_v1  ;;  %1032 = vmatprep.subr.bf16.mxu1 %v1213_v3  ;;  %v310_v6 = vld [vmem:[%s1438_s4 + $0x18] sm:$0xff]  ;;  %v329_v7 = vand.u32 4294901760, %v309_v2  ;;  %v1215_v9 = vmov 0.0   ;;  %s293_s13 = sld [smem:[#allocation2]] }
  0x28   : > { %v332_v8 = vand.u32 4294901760, %v310_v6  ;;  %1007 = vmatprep.mubr.msk.f32.mxu0 %vm1214_vm0, %v1215_v9  ;;  %s929_s14 = sld [smem:[#allocation2 + $0x1]]  ;;  %974 = vmatprep.mubr.msk.f32.mxu1 %vm1214_vm0, %v1215_v9  ;;  %s930_s16 = sld [smem:[#allocation2 + $0x2]]  ;;  %vm318_vm1 = vcmask 261120   ;;  %v931_v53 = vld [vmem:[%s1439_s5] ss:$0 sm:$0xff] }
  0x29   : > { %v1346_v10 = vpack.c.bf16 %v326_v5, %v323_v4  ;;  %s282_s15 = scalar_select %p281_p7, %s1273_s25, 1  ;;  %v403_v12 = vsub.f32 %v307_v0, %v323_v4  ;;  %v410_v13 = vsub.f32 %v308_v1, %v326_v5  ;;  %v417_v21 = vsub.f32 %v309_v2, %v329_v7 }
  0x2a   : > { %v1351_v11 = vpack.c.bf16 %v332_v8, %v329_v7  ;;  %v424_v22 = vsub.f32 %v310_v6, %v332_v8  ;;  %s278_s12 = sand.u32 1, %s1202_s22   ;;  %vm808_vm2 = vcmask 130048  }
  0x2b   : > { %1052 = vmatpush3.bf16.msra.mxu0 %v1346_v10  ;;  %1034 = vmatpush3.bf16.msra.mxu1 %v1346_v10  ;;  %s926_s17 = sshll.u32 %s282_s15, 3  ;;  %v404_v26 = vand.u32 4294901760, %v403_v12  ;;  %v411_v27 = vand.u32 4294901760, %v410_v13  ;;  %v418_v29 = vand.u32 4294901760, %v417_v21  ;;  %v1045_v49 = vpack.c.bf16 %v410_v13, %v403_v12  ;;  %s811_s28 = scalar_lea.sflag [#allocation3], %s278_s12 }
  0x2c   : > { %1053 = vmatprep.subr.bf16.mxu0 %v1213_v3  ;;  %1035 = vmatprep.subr.bf16.mxu1 %v1213_v3  ;;  %s284_s20 = scalar_lea.vmem %s1435_s1, %s926_s17  ;;  %s288_s29 = scalar_lea.vmem %s1436_s2, %s926_s17  ;;  %v425_v33 = vand.u32 4294901760, %v424_v22  ;;  %v1048_v50 = vpack.c.bf16 %v424_v22, %v417_v21 }
  0x2d   : > { %s292_s9 = scalar_lea.vmem %s1437_s3, %s926_s17  ;;  %v294_v14 = vld [vmem:[%s284_s20] sm:$0xff]  ;;  %v295_v16 = vstv %s293_s13  ;;  %v405_v31 = vsub.f32 %v403_v12, %v404_v26  ;;  %v412_v32 = vsub.f32 %v410_v13, %v411_v27  ;;  %v1057_v36 = vpack.c.bf16 %v411_v27, %v404_v26  ;;  %s925_s13 = sshll.u32 %s278_s12, 3 }
  0x2e   : > { %v298_v15 = vld [vmem:[%s288_s29] sm:$0xff]  ;;  %v299_v17 = vstv %s929_s14  ;;  %v296_v19 = vmul.f32 %v295_v16, %v294_v14  ;;  %v304_v23 = vstv %s930_s16  ;;  %v419_v39 = vsub.f32 %v417_v21, %v418_v29  ;;  %s933_s16 = sshll.u32 %s1273_s25, 7  ;;  %s280_s17 = scalar_lea.vmem [#allocation5], %s925_s13 }
  0x2f   : > { %v303_v18 = vld [vmem:[%s292_s9] sm:$0xff]  ;;  %1055 = vmatpush3.bf16.msra.mxu0 %v1351_v11  ;;  %1037 = vmatpush3.bf16.msra.mxu1 %v1351_v11  ;;  %v300_v20 = vmul.f32 %v299_v17, %v298_v15  ;;  %v406_v37 = vand.u32 4294901760, %v405_v31  ;;  %v413_v38 = vand.u32 4294901760, %v412_v32  ;;  %v426_v40 = vsub.f32 %v424_v22, %v425_v33  ;;  %s824_s18 = sshll.u32 %s280_s17, 4  ;;  %s1392_s26 = scalar_lea.hbm %s1440_s6, %s933_s16  ;;  %s1394_s18 = int_to_ptr.vmem [resolvable:$true] %s824_s18 }
  0x30   : > { %1056 = vmatprep.subr.bf16.mxu0 %v1213_v3  ;;  %1038 = vmatprep.subr.bf16.mxu1 %v1213_v3  ;;  %v305_v25 = vmul.f32 %v304_v23, %v303_v18  ;;  %v1060_v44 = vpack.c.bf16 %v425_v33, %v418_v29  ;;  %v420_v45 = vand.u32 4294901760, %v419_v39  ;;  %s1144_s29 = scalar_lea.vmem %s1394_s18, 128  ;;  %s1216_s25 = smov [#allocation5]  }
  0x31   : > { %v301_v24 = vadd.f32 %v300_v20, %v296_v19  ;;  %v1039_v43 = vpack.c.bf16 %v413_v38, %v406_v37  ;;  %v427_v46 = vand.u32 4294901760, %v426_v40  ;;  %p1145_p8 = scmp.ne.s32.totalorder %s1394_s18, %s1144_s29  ;;  %s1148_s10 = sshll.u32 %s1216_s25, 4  ;;  %s1149_s10 = int_to_ptr.vmem [resolvable:$false] %s1148_s10 }
  0x32   : > { %s1150_s11 = scalar_lea.vmem %s1149_s10, 256  ;;  %p1151_p11 = scmp.lt.s32.totalorder %s1394_s18, %s1149_s10 }
  0x33   : > { %v306_v28 = vadd.f32 %v305_v25, %v301_v24  ;;  %v1042_v48 = vpack.c.bf16 %v427_v46, %v420_v45  ;;  %p1146_p9 = pnand %p1145_p8, %p1290_p5  ;;  %p1152_p12 = scmp.lt.s32.totalorder %s1150_s11, %s1144_s29 }
  0x35   : > { %v320_v30 = vsel %vm318_vm1, %v306_v28, 0  ;;  %p1147_p10 = pneg %p1146_p9  ;;  %p1153_p13 = por %p1152_p12, %p1151_p11 }
  0x36   : > { %v391_v34 = vand.u32 4294901760, %v320_v30 }
  0x37   : > { %p1154_p0 = pnand %p1153_p13, %p1147_p10 }
  0x38   : > { %v392_v35 = vsub.f32 %v320_v30, %v391_v34 }
  0x3a   : > { %v393_v41 = vand.u32 4294901760, %v392_v35 }
  0x3c   : > { %1008 = vmatmul.mubr.f32.vlgmr.msra.gmra.mrb[0].mxu0 %v393_v41  ;;  %v394_v42 = vsub.f32 %v392_v35, %v393_v41 }
  0x3d   : > { %1058 = vmatpush3.bf16.msra.mxu0 %v1057_v36  ;;  %1018 = vmatprep.mubr.msk.f32.mxu0 %vm1214_vm0, %v1215_v9 }
  0x3e   : > { %v395_v47 = vand.u32 4294901760, %v394_v42  ;;  %1059 = vmatprep.subr.bf16.mxu0 %v1213_v3 }
  0x40   : > { %975 = vmatmul.mubr.f32.vlgmr.msra.gmra.mrb[0].mxu1 %v395_v47 }
  0x41   : > { %1040 = vmatpush3.bf16.msra.mxu1 %v1039_v43  ;;  %1061 = vmatpush3.bf16.msra.mxu0 %v1060_v44 }
  0x42   : > { %1041 = vmatprep.subr.bf16.mxu1 %v1213_v3  ;;  %1062 = vmatprep.subr.bf16.mxu0 %v1213_v3 }
  0x43   : > { %985 = vmatprep.mubr.msk.f32.mxu1 %vm1214_vm0, %v1215_v9 }
  0x44   : > { %1019 = vmatmul.mubr.f32.vlgmr.msra.gmra.mrb[0].mxu0 %v391_v34 }
  0x45   : > { %1043 = vmatpush3.bf16.msra.mxu1 %v1042_v48  ;;  %1064 = vmatpush3.bf16.msra.mxu0 %v1346_v10 }
  0x46   : > { %1044 = vmatprep.subr.bf16.mxu1 %v1213_v3  ;;  %1065 = vmatprep.subr.bf16.mxu0 %v1213_v3 }
  0x47   : > { %1029 = vmatprep.mubr.msk.f32.mxu0 %vm1214_vm0, %v1215_v9 }
  0x48   : > { %986 = vmatmul.mubr.f32.vlgmr.msra.gmra.mrb[0].mxu1 %v391_v34 }
  0x49   : > { %1046 = vmatpush3.bf16.msra.mxu1 %v1045_v49  ;;  %1067 = vmatpush3.bf16.msra.mxu0 %v1351_v11 }
  0x4a   : > { %1047 = vmatprep.subr.bf16.mxu1 %v1213_v3  ;;  %996 = vmatprep.mubr.msk.f32.mxu1 %vm1214_vm0, %v1215_v9 }
  0x4c   : > { %1030 = vmatmul.mubr.f32.vlgmr.msra.gmra.mrb[0].mxu0 %v391_v34 }
  0x4d   : > { %1049 = vmatpush3.bf16.msra.mxu1 %v1048_v50 }
  0x50   : > { %997 = vmatmul.mubr.f32.vlgmr.msra.gmra.mrb[0].mxu1 %v392_v35 }
 0x11f   : > { %v803_v51 = vpop.f32.mrb[0].mxu0 }
 0x120   : > { %v1031_v52 = vpop.f32.mrb[1].mxu0 }
 0x123   : > { %v568_v54 = vpop.f32.mrb[0].mxu1 }
 0x124   : > { %v1068_v55 = vadd.f32 %v931_v53, %v568_v54  ;;  %v998_v56 = vpop.f32.mrb[1].mxu1 }
 0x126   : > { %v1069_v57 = vadd.f32 %v1068_v55, %v803_v51 }
 0x128   : > { %v807_v58 = vmax.f32 %v1069_v57, 0.0 }
 0x12a   : > { %809 = vst.msk [vmem:[%s280_s17] sm:$0xff] %vm808_vm2, %v807_v58 }
 0x12b   : > { %1157 = shalt.err (!%p1154_p0)
}
 0x12c   : > { %s1158_s9 = scalar_lea.hbm %s1392_s26, 128  ;;  %s1162_s14 = scalar_lea.hbm %s1440_s6, 256 }
 0x12d   : > { %p1159_p1 = scmp.ne.s32.totalorder %s1392_s26, %s1158_s9  ;;  %p1163_p4 = scmp.lt.u32.totalorder %s1392_s26, %s1440_s6 }
 0x12e   : > { %p1164_p7 = scmp.lt.u32.totalorder %s1162_s14, %s1158_s9  ;;  %p1166_p9 = scmp.lt.u32.totalorder %s1158_s9, %s1392_s26 }
 0x12f   : > { %p1160_p2 = pnand %p1159_p1, %p1290_p5 }
 0x130   : > { %p1165_p8 = por %p1164_p7, %p1163_p4 }
 0x131   : > { %p1161_p3 = pneg %p1160_p2 }
 0x132   : > { %p1167_p10 = por %p1166_p9, %p1165_p8 }
 0x134   : > { %p1168_p11 = pnand %p1167_p10, %p1161_p3 }
 0x136   : > { %1171 = shalt.err (!%p1168_p11)
}
 0x137   : > { %1082 = dma.vmem_to_hbm [thread:$0]  (%p1290_p5), %s1394_s18, 128, %s1392_s26, %s811_s28  }
 0x138 PF: > { %p1094_p12 = scmp.ge.s32.totalorder %s1210_s24, 2  ;;  %s836_s17 = sand.u32 1, %s1198_s21  }
 0x139   : > { %s837_s19 = scalar_lea.sflag [#allocation3], %s836_s17 }
 0x13a   : > { %p1089_p13 = pnand %p1094_p12, %p1294_p6 }
 0x13c   : > { %1193 = dma.done.wait (!%p1089_p13), %s837_s19, 128  }
 0x13d   : > { %1195 = vsyncadd (!%p1089_p13), %s837_s19, 4294967168  ;;  %p17_p0 = scmp.ge.s32.totalorder %s1277_s27, 4   ;;  %s1444_s21 = smov %s1202_s22 }
 0x13e   : > { %s1445_s22 = smov %s1206_s23  ;;  %s1446_s23 = smov %s1288_s30 }
 0x13f   : > { %s1447_s24 = smov %s1277_s27  ;;  %19 = sbr.rel (!%p17_p0) target bundleno = 4 (0x4), region = 90 }
 0x146   :  { %842 = vsyncpa [#allocation3], 1 }
 0x147   :  { %844 = vsyncpa [#allocation3 + $0x1], 1 }
 0x148   :  { %845 = vsyncpa [#allocation4], 1 }
 0x149   :  { %847 = vsyncpa [#allocation4 + $0x1], 1 }

</bundles_post_ra>
